<compile_context>
chip_gen: v7x
topology: tpu7x:2x2x1
jax: 0.10.0
libtpu: 0.0.40
codegen_flags: <defaults>
</compile_context>

<pallas_src>
import functools
import math

import jax
import jax.numpy as jnp
from jax.experimental import pallas as pl
from jax.experimental.pallas import tpu as pltpu

_MIB = 1024 * 1024


def _speaker_embedding_kernel(ids_ref, tab_ref, *rest, k: int):
    """Writes one (T, L) lane-dense slab of the packed output.

    ids_ref:    (T, k) int32      -- ids for this tile (values 0/1)
    tab_ref:    (2, L)            -- embedding rows, each tiled k times along lanes
    expand_ref: (k, L) sel_dtype  -- (only when k>1) expand[j, j*D:(j+1)*D] == 1
    out_ref:    (T, L)            -- L = k*D, always a multiple of 128 lanes
    """
    e0 = tab_ref[0:1, :]                               # (1, L)
    e1 = tab_ref[1:2, :]                               # (1, L)
    ids = ids_ref[...]                                 # (T, k) int32

    if k == 1:
        # D is already a multiple of 128: select straight off the (T, 1) ids.
        (out_ref,) = rest
        out_ref[...] = jnp.where(ids != 0, e1, e0).astype(out_ref.dtype)
    else:
        expand_ref, out_ref = rest
        # Expand each id to its D-lane group with one MXU matmul (the MXU is
        # otherwise idle, so this keeps the VALU slot free for the store-bound
        # writeback).  Each output element is a sum with exactly one non-zero
        # 0/1 term, so the result is exactly 0.0 or 1.0 and the select below
        # is bitwise exact.
        sel = jnp.dot(ids.astype(expand_ref.dtype), expand_ref[...],
                      preferred_element_type=expand_ref.dtype)     # (T, L)
        out_ref[...] = jnp.where(sel != 0, e1, e0).astype(out_ref.dtype)


def _round_up(x: int, m: int) -> int:
    return ((x + m - 1) // m) * m


@jax.jit
def speaker_embedding_pallas(speaker_id, embedding_table):
    """speaker_id: (B, S) ints in {0, 1}; embedding_table: (2, D).

    Returns (B, S, D) == embedding_table[speaker_id]  (nn.Embedding forward).
    """
    B, S = speaker_id.shape
    D = embedding_table.shape[1]
    dtype = embedding_table.dtype
    itemsize = jnp.dtype(dtype).itemsize
    N = B * S

    # Lane packing: view the (N, D) output as (ceil(N/k), k*D); k*D is always
    # a multiple of 128 -> unmasked full-lane stores on every output row.
    # Large k (e.g. odd D -> k=128) stays cheap because the expansion is a
    # single MXU matmul, not an unrolled MAC.
    k = 128 // math.gcd(D, 128)
    L = k * D
    R = -(-N // k)                       # rows of the packed output

    # Sublane granularity of the output tile (8 for 4-byte, 16 for 2-byte dtypes).
    sub = {4: 8, 2: 16, 1: 32}.get(itemsize, 8)

    # Tile sizing: biggest output tile that comfortably fits scoped VMEM
    # (2x double-buffered output + selector temp + per-tile ids).  8 MiB tiles
    # on 128-MiB-VMEM chips (v5e/v6e), 4 MiB on 64-MiB chips (v7x).
    try:
        vmem_cap = int(pltpu.get_tpu_info().vmem_capacity_bytes)
    except Exception:  # conservative fallback if the query is unavailable
        vmem_cap = 64 * _MIB
    tile_cap_bytes = 8 * _MIB if vmem_cap >= 96 * _MIB else 4 * _MIB

    bytes_per_row = L * itemsize
    rows_cap = max(sub, (tile_cap_bytes // bytes_per_row) // sub * sub)
    if R <= rows_cap:
        tile_rows = R                    # one block == full dim (no row padding)
    else:
        tile_rows = rows_cap             # multiple of `sub`; last block is ragged
    grid = (pl.cdiv(R, tile_rows),)

    # ids: flatten, pad with at most k-1 zeros, pack k ids per output row.
    ids_flat = speaker_id.reshape(-1).astype(jnp.int32)
    pad = R * k - N
    if pad:
        ids_flat = jnp.pad(ids_flat, (0, pad))
    ids_packed = ids_flat.reshape(R, k)

    # Embedding rows tiled k times along lanes (tiny, built once in the wrapper).
    table_tiled = jnp.tile(embedding_table, (1, k))                # (2, L)

    kernel = functools.partial(_speaker_embedding_kernel, k=k)

    operands = [ids_packed, table_tiled]
    in_specs = [
        pl.BlockSpec((tile_rows, k), lambda i: (i, 0)),  # per-tile ids (not resident)
        pl.BlockSpec((2, L), lambda i: (0, 0)),          # both embedding rows
    ]
    if k > 1:
        # 0/1 lane-expansion matrix for the MXU expansion; compact dtype for
        # 16-bit tables so the (tile_rows, L) selector temp stays small in VMEM.
        sel_dtype = jnp.bfloat16 if itemsize == 2 else jnp.float32
        lane_group = jnp.arange(L, dtype=jnp.int32) // D           # (L,)
        expand = (lane_group[None, :] ==
                  jnp.arange(k, dtype=jnp.int32)[:, None]).astype(sel_dtype)
        operands.append(expand)
        in_specs.append(pl.BlockSpec((k, L), lambda i: (0, 0)))

    out_packed = pl.pallas_call(
        kernel,
        out_shape=jax.ShapeDtypeStruct((R, L), dtype),
        grid_spec=pltpu.PrefetchScalarGridSpec(
            num_scalar_prefetch=0,
            grid=grid,
            in_specs=in_specs,
            out_specs=pl.BlockSpec((tile_rows, L), lambda i: (i, 0)),
        ),
        compiler_params=pltpu.CompilerParams(
            dimension_semantics=("parallel",),   # lets v7x split writeback over 2 TCs
            vmem_limit_bytes=int(min(3 * vmem_cap // 4,
                                     4 * tile_cap_bytes + 16 * _MIB)),
        ),
    )(*operands)

    # Un-pack: (R, k*D) -> (R*k, D) is a pure bitcast.  Only when k does not
    # divide N is a (small) trailing slice needed.
    if k == 1:
        return out_packed.reshape(B, S, D)
    out = out_packed.reshape(R * k, D)
    if R * k != N:
        out = out[:N]
    return out.reshape(B, S, D)


if __name__ == "__main__":
    # Module config: num_embeddings=2, embedding_dim=model_dim.
    model_dim = 32
    batch, seq = 2, 8

    key = jax.random.PRNGKey(0)
    k_emb, k_ids = jax.random.split(key)

    # Deterministic init mirroring nn.Embedding default (N(0, 1)).
    embedding_table = jax.random.normal(k_emb, (2, model_dim), dtype=jnp.float32)
    speaker_id = jax.random.randint(k_ids, (batch, seq), 0, 2, dtype=jnp.int32)

    out = speaker_embedding_pallas(speaker_id, embedding_table)
    out = jax.block_until_ready(out)

    # Reference: plain JAX gather (== nn.Embedding forward).
    ref = embedding_table[speaker_id]
    assert out.shape == (batch, seq, model_dim)
    assert jnp.allclose(out, ref), "mismatch vs reference gather"

    print("KERNEL_OK")
</pallas_src>

<mosaic_0001>
module attributes {stable_mosaic.version = 11 : i64} {
  func.func @_speaker_embedding_kernel(%arg0: i32, %arg1: memref<4x4xi32, #tpu.memory_space<vmem>>, %arg2: memref<2x128xf32, #tpu.memory_space<vmem>>, %arg3: memref<4x128xf32, #tpu.memory_space<vmem>>, %arg4: memref<4x128xf32, #tpu.memory_space<vmem>>) attributes {dimension_semantics = [#tpu.dimension_semantics<parallel>], iteration_bounds = array<i64: 1>, scalar_prefetch = 0 : i64, scratch_operands = 0 : i64, tpu.core_type = #tpu.core_type<tc>, window_params = [{transform_indices = @transform_0, window_bounds = array<i64: 4, 4>}, {pipeline_mode = #tpu.pipeline_mode<synchronous>, transform_indices = @transform_1, window_bounds = array<i64: 2, 128>}, {pipeline_mode = #tpu.pipeline_mode<synchronous>, transform_indices = @transform_2, window_bounds = array<i64: 4, 128>}, {transform_indices = @transform_3, window_bounds = array<i64: 4, 128>}]} {
    %c0 = arith.constant 0 : index
    %c0_0 = arith.constant 0 : index
    %0 = vector.load %arg2[%c0, %c0_0] : memref<2x128xf32, #tpu.memory_space<vmem>>, vector<1x128xf32>
    %c1 = arith.constant 1 : index
    %c0_1 = arith.constant 0 : index
    %1 = vector.load %arg2[%c1, %c0_1] : memref<2x128xf32, #tpu.memory_space<vmem>>, vector<1x128xf32>
    %c0_2 = arith.constant 0 : index
    %c0_3 = arith.constant 0 : index
    %2 = vector.load %arg1[%c0_2, %c0_3] : memref<4x4xi32, #tpu.memory_space<vmem>>, vector<4x4xi32>
    %3 = arith.sitofp %2 : vector<4x4xi32> to vector<4x4xf32>
    %c0_4 = arith.constant 0 : index
    %c0_5 = arith.constant 0 : index
    %4 = vector.load %arg3[%c0_4, %c0_5] : memref<4x128xf32, #tpu.memory_space<vmem>>, vector<4x128xf32>
    %cst = arith.constant dense<0.000000e+00> : vector<4x128xf32>
    %5 = tpu.matmul %3, %4, %cst {dimension_numbers = #tpu.dot_dimension_numbers<[1], [0], [0], [1], [0, 0, 1, 1], [], []>} : vector<4x4xf32>, vector<4x128xf32>, vector<4x128xf32> -> vector<4x128xf32>
    %cst_6 = arith.constant 0.000000e+00 : f32
    %6 = vector.broadcast %cst_6 : f32 to vector<4x128xf32>
    %7 = arith.cmpf one, %5, %6 : vector<4x128xf32>
    %8 = vector.shape_cast %1 : vector<1x128xf32> to vector<1x128xf32>
    %9 = vector.broadcast %8 : vector<1x128xf32> to vector<4x128xf32>
    %10 = vector.shape_cast %0 : vector<1x128xf32> to vector<1x128xf32>
    %11 = vector.broadcast %10 : vector<1x128xf32> to vector<4x128xf32>
    %12 = arith.select %7, %9, %11 : vector<4x128xi1>, vector<4x128xf32>
    %c0_7 = arith.constant 0 : index
    %c0_8 = arith.constant 0 : index
    %13 = vector.load %arg4[%c0_7, %c0_8] : memref<4x128xf32, #tpu.memory_space<vmem>>, vector<4x128xf32>
    tpu.vector_store %arg4[%c0_7, %c0_8], %12 {strides = array<i32>} : memref<4x128xf32, #tpu.memory_space<vmem>>, vector<4x128xf32>,
    return
  }
  func.func @transform_0(%arg0: i32) -> (i32, i32) {
    %c0_i32 = arith.constant 0 : i32
    %c0_i32_0 = arith.constant 0 : i32
    return %arg0, %c0_i32 : i32, i32
  }
  func.func @transform_1(%arg0: i32) -> (i32, i32) {
    %c0_i32 = arith.constant 0 : i32
    %c0_i32_0 = arith.constant 0 : i32
    %c0_i32_1 = arith.constant 0 : i32
    return %c0_i32, %c0_i32_0 : i32, i32
  }
  func.func @transform_2(%arg0: i32) -> (i32, i32) {
    %c0_i32 = arith.constant 0 : i32
    %c0_i32_0 = arith.constant 0 : i32
    %c0_i32_1 = arith.constant 0 : i32
    return %c0_i32, %c0_i32_0 : i32, i32
  }
  func.func @transform_3(%arg0: i32) -> (i32, i32) {
    %c0_i32 = arith.constant 0 : i32
    %c0_i32_0 = arith.constant 0 : i32
    return %arg0, %c0_i32 : i32, i32
  }
}

</mosaic_0001>

<bundles_post_ra>
// kernel: tile.9
= control target key start
LH: loop header
LB: loop body
LE: loop exit
PB: predicated region body
PF: predicated region fallthrough
CT: control target
= control target key end

     0   :  { %s29_s10 = smov 3  ;;  %s10_s11 = smov 3  ;;  %vm12_vm0 = vcmask 261120   ;;  %vm19_vm1 = vcmask 1048320   ;;  %vm26_vm2 = vcmask 785920   ;;  %vm33_vm3 = vcmask 523520   ;;  %s67_s0 = inlined_call_operand.vmem [shape: f32[2,4,32], index: 0, kind: input, shape index: {}]   ;;  %s68_s1 = inlined_call_operand.vmem [shape: f32[2,128], index: 1, kind: output, shape index: {}]  }
   0x1   :  { %v41_v0 = vld [vmem:[%s67_s0 + $0x4] sm:$0xf]  ;;  %v8_v1 = vld [vmem:[%s67_s0] sm:$0xf]  ;;  %s15_s0 = smov 3  ;;  %s22_s12 = smov 3 }
   0x2   :  { %7 = vst [vmem:[#allocation1 + $0x8] sm:$0xf] %v41_v0  ;;  %9 = vst [vmem:[#allocation1] sm:$0xf] %v8_v1  ;;  %s45_s13 = smov 96   ;;  %s46_s14 = smov 32  }
   0x3   :  { %s47_s15 = smov 64  }
   0x9   :  { %v16_v2 = vld [vmem:[#allocation1 + $0x3] ss:$8 sm:%s15_s0]   ;;  %v30_v3 = vld [vmem:[#allocation1 + $0x1] ss:$8 sm:%s29_s10]   ;;  %v11_v4 = vld [vmem:[#allocation1] ss:$8 sm:%s10_s11]  }
   0xa   :  { %17 = vrot.lane.b32.xlu0 %v16_v2, %s45_s13  ;;  %31 = vrot.lane.b32.xlu1 %v30_v3, %s46_s14  ;;  %v23_v5 = vld [vmem:[#allocation1 + $0x2] ss:$8 sm:%s22_s12]   ;;  %13 = vst.msk [vmem:[#allocation0] sm:$0x3] %vm12_vm0, %v11_v4  }
   0xe   :  { %24 = vrot.lane.b32.xlu0 %v23_v5, %s47_s15 }
  0x7c   :  { %v18_v6 = vpop.permute.xlu0 %17   ;;  %v32_v7 = vpop.permute.xlu1 %31  }
  0x7d   :  { %20 = vst.msk [vmem:[#allocation0] sm:$0x3] %vm19_vm1, %v18_v6  }
  0x80   :  { %v25_v8 = vpop.permute.xlu0 %24  }
  0x81   :  { %27 = vst.msk [vmem:[#allocation0] sm:$0x3] %vm26_vm2, %v25_v8  }
  0x82   :  { %34 = vst.msk [vmem:[#allocation0] sm:$0x3] %vm33_vm3, %v32_v7  }
  0x89   :  { %v38_v9 = vld [vmem:[#allocation0] sm:$0x3] }
  0x8a   :  { %40 = vst [vmem:[%s68_s1] sm:$0x3] %v38_v9 }

// kernel: speaker_embedding_pallas.1
= control target key start
LH: loop header
LB: loop body
LE: loop exit
PB: predicated region body
PF: predicated region fallthrough
CT: control target
= control target key end

     0   :  { %vm23_vm0 = vcmask 1043456   ;;  %v125_v0 = vmov 0.0   ;;  %vm126_vm1 = vmmov 0   ;;  %vm19_vm2 = vcmask 31744   ;;  %s162_s2 = inlined_call_operand.vmem [shape: f32[4,128], index: 2, kind: input, shape index: {}]   ;;  %s163_s0 = inlined_call_operand.vmem [shape: s32[4,4], index: 0, kind: input, shape index: {}]   ;;  %s164_s1 = inlined_call_operand.vmem [shape: f32[2,128], index: 1, kind: input, shape index: {}]   ;;  %s165_s3 = inlined_call_operand.vmem [shape: f32[4,128], index: 3, kind: output, shape index: {}]  }
   0x1   :  { %118 = vmatprep.subr.mxu0 %v125_v0  ;;  %v18_v1 = vld [vmem:[%s162_s2] sm:$0xf]  ;;  %120 = vmatprep.mubr.msk.f32.mxu0 %vm126_vm1, %v125_v0 }
   0x2   :  { %v16_v2 = vld [vmem:[%s163_s0] sm:$0xf]  ;;  %119 = vmatpush3.msk.msra.mxu0 %vm23_vm0, %v18_v1 }
   0x3   :  { %v17_v3 = vcvt.s32.f32 %v16_v2  ;;  %v115_v4 = vld [vmem:[%s164_s1] ss:$0 sm:$0xff]  ;;  %v114_v5 = vld [vmem:[%s164_s1 + $0x1] ss:$0 sm:$0xff] }
   0x5   :  { %121 = vmatmul.mubr.msk.f32.vlgmr.msra.gmra.mrb[0].mxu0 %vm19_vm2, %v17_v3 }
  0xd8   :  { %v93_v6 = vpop.f32.mrb[0].mxu0 }
  0xd9   :  { %vm97_vm3 = vcmp.ne.f32.partialorder %v93_v6, 0.0  ;;  %v122_v7 = vpop.f32.mrb[1].mxu0 }
  0xda   :  { %v106_v8 = vsel %vm97_vm3, %v114_v5, %v115_v4 }
  0xdb   :  { %107 = vst [vmem:[%s165_s3] sm:$0xf] %v106_v8 }

</bundles_post_ra>
